<compile_context>
chip_gen: v7x
topology: tpu7x:2x2x1
jax: 0.10.0
libtpu: 0.0.40
codegen_flags: <defaults>
</compile_context>

<pallas_src>
import math

import jax
import jax.numpy as jnp
from jax import lax
from jax.experimental import pallas as pl
from jax.experimental.pallas import tpu as pltpu

CHUNK = 256    # inner lane chunk: h1 = (101, 256) f32 ~= 26 vregs, stays in-register
TB_MAX = 8192  # lanes per grid tile: amortizes per-grid-step overhead; VMEM cost ~8 B/lane


def _mlp_kernel(x_ref, w1_ref, w2_ref, w3_ref, o_ref):
    # Resident augmented weights (constant index_map -> loaded once, stay in VMEM).
    w1a = w1_ref[...]                                   # (101, 2)   [w1 | b1 ; 0 1]
    w2a = w2_ref[...]                                   # (11, 101)  [w2 | b2 ; 0..0 1]
    w3a = w3_ref[...]                                   # (1, 11)    [w3 | b3]

    # Hoisted constants (do NOT rebuild per chunk -- JAX won't CSE broadcasts).
    row0 = lax.broadcasted_iota(jnp.int32, (2, CHUNK), 0) == 0   # row-0 mask
    ones2 = jnp.ones((2, CHUNK), jnp.float32)

    tb = x_ref.shape[1]
    n_chunks = tb // CHUNK                              # static at trace time

    def body(c, carry):
        off = pl.multiple_of(c * CHUNK, CHUNK)
        xc = x_ref[:, pl.ds(off, CHUNK)]                                  # (1, CHUNK)
        # Augment x with a ones row so biases ride through the MXU.
        xa = jnp.where(row0, jnp.broadcast_to(xc, (2, CHUNK)), ones2)     # (2, CHUNK)

        # Layer 1 (+b1) on MXU; only the ReLU touches the VPU.
        h1 = jnp.maximum(
            jnp.dot(w1a, xa, preferred_element_type=jnp.float32), 0.0)    # (101, CHUNK), row 100 == 1
        # Layer 2 (+b2) on MXU.
        h2 = jnp.maximum(
            jnp.dot(w2a, h1, preferred_element_type=jnp.float32), 0.0)    # (11, CHUNK), row 10 == 1
        # Layer 3 (+b3) on MXU (keeps the cross-sublane reduce off the VPU/XLU).
        y = jnp.dot(w3a, h2, preferred_element_type=jnp.float32)          # (1, CHUNK)

        o_ref[:, pl.ds(off, CHUNK)] = y.astype(o_ref.dtype)
        return carry

    lax.fori_loop(0, n_chunks, body, 0, unroll=True)


def pack_params(p):
    """Torch-layout params -> kernel-native augmented (bias-folded) weights."""
    w1, b1 = p["w1"], p["b1"]            # (100, 1), (100,)
    w2, b2 = p["w2"], p["b2"]            # (10, 100), (10,)
    w3, b3 = p["w3"], p["b3"]            # (1, 10), (1,)

    w1_aug = jnp.concatenate(
        [jnp.concatenate([w1, b1[:, None]], axis=1),               # (100, 2)
         jnp.array([[0.0, 1.0]], jnp.float32)], axis=0)            # -> (101, 2)
    w2_aug = jnp.concatenate(
        [jnp.concatenate([w2, b2[:, None]], axis=1),               # (10, 101)
         jnp.concatenate([jnp.zeros((1, 100), jnp.float32),
                          jnp.ones((1, 1), jnp.float32)], axis=1)], axis=0)  # -> (11, 101)
    w3_aug = jnp.concatenate([w3, b3[None, :]], axis=1)            # (1, 11)
    return w1_aug, w2_aug, w3_aug


def simple_model_forward(x, params):
    """x: (B, 1) float32 (PyTorch layout). Returns (B, 1) float32."""
    B = x.shape[0]
    w1a, w2a, w3a = pack_params(params)

    # Tile selection: chunk-aligned tiles up to TB_MAX lanes, and >= 2 grid steps
    # so both v7x TensorCores get work; VMEM is never the limit here.
    n_chunks = max(pl.cdiv(B, CHUNK), 2)
    cpt = min(n_chunks, TB_MAX // CHUNK)           # chunks per grid tile
    if pl.cdiv(n_chunks, cpt) < 2:
        cpt = pl.cdiv(n_chunks, 2)
    grid = pl.cdiv(n_chunks, cpt)
    tb = cpt * CHUNK
    b_pad = grid * tb

    x_t = x.reshape(1, B)                          # batch onto lanes (free: in_features == 1)
    if b_pad != B:                                 # pad only when ragged
        x_t = jnp.pad(x_t, ((0, 0), (0, b_pad - B)))

    resident = lambda a: pl.BlockSpec(a.shape, lambda i: (0, 0))

    out_t = pl.pallas_call(
        _mlp_kernel,
        out_shape=jax.ShapeDtypeStruct((1, b_pad), jnp.float32),
        grid=(grid,),
        in_specs=[
            pl.BlockSpec((1, tb), lambda i: (0, i)),     # x tile (lane-dense)
            resident(w1a), resident(w2a), resident(w3a),
        ],
        out_specs=pl.BlockSpec((1, tb), lambda i: (0, i)),   # lane-dense output tile
        compiler_params=pltpu.CompilerParams(
            dimension_semantics=("parallel",),
        ),
    )(x_t, w1a, w2a, w3a)

    out = out_t if b_pad == B else out_t[:, :B]
    return out.reshape(B, 1)


def init_params(key):
    """PyTorch default Linear init (uniform +/- 1/sqrt(fan_in)), torch layout."""
    def linear(k, fan_in, fan_out):
        kw, kb = jax.random.split(k)
        bound = 1.0 / math.sqrt(fan_in)
        w = jax.random.uniform(kw, (fan_out, fan_in), jnp.float32, -bound, bound)
        b = jax.random.uniform(kb, (fan_out,), jnp.float32, -bound, bound)
        return w, b

    k1, k2, k3 = jax.random.split(key, 3)
    w1, b1 = linear(k1, 1, 100)      # (100, 1), (100,)
    w2, b2 = linear(k2, 100, 10)     # (10, 100), (10,)
    w3, b3 = linear(k3, 10, 1)       # (1, 10), (1,)
    return {"w1": w1, "b1": b1, "w2": w2, "b2": b2, "w3": w3, "b3": b3}


def reference_forward(x, p):
    """Plain-JAX reference with exact PyTorch Linear semantics (y = x W^T + b)."""
    h1 = jnp.maximum(x @ p["w1"].T + p["b1"], 0.0)     # (B, 100)
    h2 = jnp.maximum(h1 @ p["w2"].T + p["b2"], 0.0)    # (B, 10)
    return h2 @ p["w3"].T + p["b3"]                    # (B, 1)


if __name__ == "__main__":
    key = jax.random.PRNGKey(0)
    pkey, xkey = jax.random.split(key)

    params = init_params(pkey)
    x = jax.random.normal(xkey, (8, 1), jnp.float32)   # batch=8, in_features=1

    out = simple_model_forward(x, params)
    out = jax.block_until_ready(out)

    ref = reference_forward(x, params)
    assert out.shape == (8, 1)
    assert jnp.allclose(out, ref, atol=1e-5, rtol=1e-5), (
        f"max abs err = {jnp.max(jnp.abs(out - ref))}"
    )

    print("KERNEL_OK")
</pallas_src>

<mosaic_0001>
module attributes {stable_mosaic.version = 11 : i64} {
  func.func @_mlp_kernel(%arg0: i32, %arg1: memref<1x256xf32, #tpu.memory_space<vmem>>, %arg2: memref<101x2xf32, #tpu.memory_space<vmem>>, %arg3: memref<11x101xf32, #tpu.memory_space<vmem>>, %arg4: memref<1x11xf32, #tpu.memory_space<vmem>>, %arg5: memref<1x256xf32, #tpu.memory_space<vmem>>) attributes {dimension_semantics = [#tpu.dimension_semantics<parallel>], iteration_bounds = array<i64: 2>, scalar_prefetch = 0 : i64, scratch_operands = 0 : i64, tpu.core_type = #tpu.core_type<tc>, window_params = [{transform_indices = @transform_0, window_bounds = array<i64: 1, 256>}, {pipeline_mode = #tpu.pipeline_mode<synchronous>, transform_indices = @transform_1, window_bounds = array<i64: 101, 2>}, {pipeline_mode = #tpu.pipeline_mode<synchronous>, transform_indices = @transform_2, window_bounds = array<i64: 11, 101>}, {pipeline_mode = #tpu.pipeline_mode<synchronous>, transform_indices = @transform_3, window_bounds = array<i64: 1, 11>}, {transform_indices = @transform_4, window_bounds = array<i64: 1, 256>}]} {
    %c0 = arith.constant 0 : index
    %c0_0 = arith.constant 0 : index
    %0 = vector.load %arg2[%c0, %c0_0] : memref<101x2xf32, #tpu.memory_space<vmem>>, vector<101x2xf32>
    %c0_1 = arith.constant 0 : index
    %c0_2 = arith.constant 0 : index
    %1 = vector.load %arg3[%c0_1, %c0_2] : memref<11x101xf32, #tpu.memory_space<vmem>>, vector<11x101xf32>
    %c0_3 = arith.constant 0 : index
    %c0_4 = arith.constant 0 : index
    %2 = vector.load %arg4[%c0_3, %c0_4] : memref<1x11xf32, #tpu.memory_space<vmem>>, vector<1x11xf32>
    %3 = tpu.iota {dimensions = array<i32: 0>} : vector<2x256xi32>
    %c0_i32 = arith.constant 0 : i32
    %4 = vector.broadcast %c0_i32 : i32 to vector<2x256xi32>
    %5 = arith.cmpi eq, %3, %4 : vector<2x256xi32>
    %cst = arith.constant 1.000000e+00 : f32
    %6 = vector.broadcast %cst : f32 to vector<2x256xf32>
    %c0_i32_5 = arith.constant 0 : i32
    %c256_i32 = arith.constant 256 : i32
    %7 = arith.muli %c0_i32_5, %c256_i32 : i32
    %8 = tpu.assume_multiple %7, 256 : i32
    %c0_6 = arith.constant 0 : index
    %9 = arith.index_cast %8 : i32 to index
    %10 = vector.load %arg1[%c0_6, %9] : memref<1x256xf32, #tpu.memory_space<vmem>>, vector<1x256xf32>
    %11 = vector.shape_cast %10 : vector<1x256xf32> to vector<1x256xf32>
    %12 = vector.broadcast %11 : vector<1x256xf32> to vector<2x256xf32>
    %13 = arith.select %5, %12, %6 : vector<2x256xi1>, vector<2x256xf32>
    %cst_7 = arith.constant dense<0.000000e+00> : vector<101x256xf32>
    %14 = tpu.matmul %0, %13, %cst_7 {dimension_numbers = #tpu.dot_dimension_numbers<[1], [0], [0], [1], [0, 0, 1, 1], [], []>} : vector<101x2xf32>, vector<2x256xf32>, vector<101x256xf32> -> vector<101x256xf32>
    %cst_8 = arith.constant 0.000000e+00 : f32
    %15 = vector.broadcast %cst_8 : f32 to vector<101x256xf32>
    %16 = arith.maximumf %14, %15 : vector<101x256xf32>
    %cst_9 = arith.constant dense<0.000000e+00> : vector<11x256xf32>
    %17 = tpu.matmul %1, %16, %cst_9 {dimension_numbers = #tpu.dot_dimension_numbers<[1], [0], [0], [1], [0, 0, 1, 1], [], []>} : vector<11x101xf32>, vector<101x256xf32>, vector<11x256xf32> -> vector<11x256xf32>
    %cst_10 = arith.constant 0.000000e+00 : f32
    %18 = vector.broadcast %cst_10 : f32 to vector<11x256xf32>
    %19 = arith.maximumf %17, %18 : vector<11x256xf32>
    %cst_11 = arith.constant dense<0.000000e+00> : vector<1x256xf32>
    %20 = tpu.matmul %2, %19, %cst_11 {dimension_numbers = #tpu.dot_dimension_numbers<[1], [0], [0], [1], [0, 0, 1, 1], [], []>} : vector<1x11xf32>, vector<11x256xf32>, vector<1x256xf32> -> vector<1x256xf32>
    %c0_12 = arith.constant 0 : index
    %21 = arith.index_cast %8 : i32 to index
    %22 = vector.load %arg5[%c0_12, %21] : memref<1x256xf32, #tpu.memory_space<vmem>>, vector<1x256xf32>
    tpu.vector_store %arg5[%c0_12, %21], %20 {strides = array<i32>} : memref<1x256xf32, #tpu.memory_space<vmem>>, vector<1x256xf32>,
    %c1_i32 = arith.constant 1 : i32
    return
  }
  func.func @transform_0(%arg0: i32) -> (i32, i32) {
    %c0_i32 = arith.constant 0 : i32
    %c0_i32_0 = arith.constant 0 : i32
    return %c0_i32, %arg0 : i32, i32
  }
  func.func @transform_1(%arg0: i32) -> (i32, i32) {
    %c0_i32 = arith.constant 0 : i32
    %c0_i32_0 = arith.constant 0 : i32
    %c0_i32_1 = arith.constant 0 : i32
    return %c0_i32, %c0_i32_0 : i32, i32
  }
  func.func @transform_2(%arg0: i32) -> (i32, i32) {
    %c0_i32 = arith.constant 0 : i32
    %c0_i32_0 = arith.constant 0 : i32
    %c0_i32_1 = arith.constant 0 : i32
    return %c0_i32, %c0_i32_0 : i32, i32
  }
  func.func @transform_3(%arg0: i32) -> (i32, i32) {
    %c0_i32 = arith.constant 0 : i32
    %c0_i32_0 = arith.constant 0 : i32
    %c0_i32_1 = arith.constant 0 : i32
    return %c0_i32, %c0_i32_0 : i32, i32
  }
  func.func @transform_4(%arg0: i32) -> (i32, i32) {
    %c0_i32 = arith.constant 0 : i32
    %c0_i32_0 = arith.constant 0 : i32
    return %c0_i32, %arg0 : i32, i32
  }
}

</mosaic_0001>

<bundles_post_ra>
// kernel: tpu_custom_call.1
= control target key start
LH: loop header
LB: loop body
LE: loop exit
PB: predicated region body
PF: predicated region fallthrough
CT: control target
= control target key end

     0   :  { %9 = vsyncpa [#allocation3], 0  ;;  %s1099_s0 = inlined_call_operand.vmem [shape: f32[1,512], index: 0, kind: input, shape index: {}]   ;;  %s1100_s1 = inlined_call_operand.vmem [shape: f32[101,2], index: 1, kind: input, shape index: {}]   ;;  %s1101_s2 = inlined_call_operand.vmem [shape: f32[11,101], index: 2, kind: input, shape index: {}]   ;;  %s1102_s3 = inlined_call_operand.vmem [shape: f32[1,11], index: 3, kind: input, shape index: {}]   ;;  %s1103_s4 = inlined_call_operand.hbm [shape: f32[1,512], index: 4, kind: output, shape index: {}]  }
   0x1   :  { %11 = vsyncpa [#allocation3 + $0x1], 0  ;;  %s915_s15 = smov 0   ;;  %s917_s16 = smov 0  }
   0x2   :  { %s919_s17 = smov 0   ;;  %s921_s18 = smov 0  }
   0x3 LB: > { %s936_s19 = sadd.s32 4294967295, %s884_s18   ;;  %s716_s20 = sadd.s32 4294967294, %s884_s18   ;;  %s884_s18 = sphi %s921_s18, %s1109_s18   ;;  %s880_s17 = sphi %s919_s17, %s1108_s17   ;;  %s876_s16 = sphi %s917_s16, %s1107_s16   ;;  %s872_s15 = sphi %s915_s15, %s1106_s15  }
   0x4   : > { %s940_s21 = sadd.s32 1, %s884_s18   ;;  %s113_s22 = sadd.s32 1, %s880_s17 }
   0x5   : > { %s110_s23 = ssub.s32 %s884_s18, %s940_s21  ;;  %p123_p0 = scmp.ne.s32.totalorder %s880_s17, %s876_s16 }
   0x6   : > { %p111_p1 = scmp.eq.s32.totalorder %s110_s23, 0  ;;  %p124_p2 = scmp.eq.s32.totalorder %s936_s19, 1 }
   0x7   : > { %p129_p3 = scmp.ne.s32.totalorder %s876_s16, %s872_s15  ;;  %p130_p4 = scmp.eq.s32.totalorder %s716_s20, 1 }
   0x8   : > { %s951_s24 = scalar_select %p111_p1, %s880_s17, %s113_s22  }
   0x9   : > { %p953_p5 = por %p124_p2, %p123_p0  ;;  %p957_p6 = por %p130_p4, %p129_p3 }
   0xa   : > { %p719_p7 = scmp.ge.s32.totalorder %s884_s18, 1  ;;  %p165_p8 = scmp.lt.s32.totalorder %s884_s18, 3 }
   0xc   : > { %p166_p9 = pnand %p719_p7, %p165_p8 }
   0xd   : > { %s721_s27 = sshll.u32 (!%p166_p9), %s936_s19, 1  ;;  %v212_v0 = vlaneseq (!%p166_p9)  ;;  %v886_v1 = vmov (!%p166_p9), 0.0   ;;  %vm269_vm1 = vcmask (!%p166_p9), 1041408   ;;  %v196_v10 = vld [vmem:[%s1100_s1] sm:$0xff] (!%p166_p9)  ;;  %vm229_vm2 = vcmask (!%p166_p9), 15360   ;;  %v197_v11 = vld [vmem:[%s1100_s1 + $0x8] sm:$0xff] (!%p166_p9) }
   0xe   : > { %169 = sbr.rel (%p166_p9) target bundleno = 754 (0x2f2), region = 36  ;;  %p191_p10 = scmp.lt.s32.totalorder (!%p166_p9), %s721_s27, 3  ;;  %340 = vmatprep.mubr.f32.mxu0 (!%p166_p9), %v886_v1  ;;  %523 = vmatprep.mubr.f32.mxu1 (!%p166_p9), %v886_v1  ;;  %v198_v12 = vld [vmem:[%s1100_s1 + $0x10] sm:$0xff] (!%p166_p9)  ;;  %v199_v13 = vld [vmem:[%s1100_s1 + $0x18] sm:$0xff] (!%p166_p9)  ;;  %v200_v14 = vld [vmem:[%s1100_s1 + $0x20] sm:$0xff] (!%p166_p9)  ;;  %vm452_vm3 = vcmask (!%p166_p9), 1044480  }
   0xf   : > { %v967_v2 = vshrl.u32 (!%p166_p9), %v212_v0, 7  ;;  %v201_v15 = vld [vmem:[%s1100_s1 + $0x28] sm:$0xff] (!%p166_p9)  ;;  %v202_v16 = vld [vmem:[%s1100_s1 + $0x30] sm:$0xff] (!%p166_p9)  ;;  %v203_v17 = vld [vmem:[%s1100_s1 + $0x38] sm:$0xff] (!%p166_p9)  ;;  %vm445_vm4 = vcmask (!%p166_p9), 826368   ;;  %vm544_vm5 = vcmask (!%p166_p9), 1042432  }
  0x10   : > { %v204_v18 = vld [vmem:[%s1100_s1 + $0x40] sm:$0xff] (!%p166_p9)  ;;  %v205_v19 = vld [vmem:[%s1100_s1 + $0x48] sm:$0xff] (!%p166_p9)  ;;  %v206_v20 = vld [vmem:[%s1100_s1 + $0x50] sm:$0xff] (!%p166_p9)  ;;  %vm887_vm6 = vmmov (!%p166_p9), 1   ;;  %vm540_vm8 = vcmask (!%p166_p9), 89088   ;;  %s187_s29 = sand.u32 (!%p166_p9), 1, %s876_s16  }
  0x11   : > { %v223_v3 = vsub.s32 (!%p166_p9), 1, %v967_v2  ;;  %v219_v4 = vsub.s32 (!%p166_p9), 0, %v967_v2  ;;  %vm214_vm0 = vcmp.eq.s32.totalorder (!%p166_p9), %v967_v2, 0  ;;  %v207_v21 = vld [vmem:[%s1100_s1 + $0x58] sm:$0xff] (!%p166_p9)  ;;  %v208_v22 = vld [vmem:[%s1100_s1 + $0x60] sm:$0x1f] (!%p166_p9)  ;;  %vm775_vm7 = vmpackc.low (!%p166_p9), %vm544_vm5, %vm887_vm6 }
  0x12   : > { %s749_s5 = sshll.u32 (!%p166_p9), %s936_s19, 5  ;;  %vm642_vm9 = vcmp.lt.s32.totalorder (!%p166_p9), %v212_v0, 256  ;;  %s646_s11 = scalar_lea.sflag (!%p166_p9), [#allocation3], %s187_s29 }
  0x13   : > { %s1057_s10 = scalar_lea.hbm (!%p166_p9), %s1103_s4, %s749_s5  ;;  %s889_s19 = smov (!%p166_p9), [#allocation2]  }
  0x14   : > { %s826_s13 = sshll.u32 (!%p166_p9), %s889_s19, 4  ;;  %s827_s13 = int_to_ptr.vmem [resolvable:$false] %s826_s13 }
  0x15   : > { %s1111_s27 = smov (!%p191_p10, %s721_s27), 3  ;;  %s828_s14 = scalar_lea.vmem %s827_s13, 64 }
  0x16   : > { %s193_s30 = scalar_lea.vmem %s1099_s0, %s1111_s27 }
  0x17   : > { %v215_v5 = vld [vmem:[%s193_s30] sm:$0x3]  ;;  %s720_s30 = sshll.u32 %s187_s29, 1 }
  0x18   : > { %v224_v6 = vrot.slane %v215_v5, %v223_v3  ;;  %v220_v7 = vrot.slane %v215_v5, %v219_v4  ;;  %s189_s6 = scalar_lea.vmem [#allocation2], %s720_s30 }
  0x19   : > { %s660_s7 = sshll.u32 %s189_s6, 4  ;;  %s1059_s7 = int_to_ptr.vmem [resolvable:$true] %s660_s7 }
  0x1a   : > { %v228_v8 = vsel %vm214_vm0, %v224_v6, 1.0  ;;  %v227_v9 = vsel %vm214_vm0, %v220_v7, 1.0  ;;  %s822_s12 = scalar_lea.vmem %s1059_s7, 32  ;;  %p829_p0 = scmp.lt.s32.totalorder %s1059_s7, %s827_s13 }
  0x1b   : > { %722 = vmatprep.subr.msk.mxu0 %vm269_vm1, %v228_v8  ;;  %p823_p11 = scmp.ne.s32.totalorder %s1059_s7, %s822_s12  ;;  %p830_p1 = scmp.lt.s32.totalorder %s828_s14, %s822_s12 }
  0x1c   : > { %723 = vmatpush1.msk.msra.mxu0 %vm269_vm1, %v227_v9 }
  0x1d   : > { %724 = vmatmul.mubr.msk.f32.vlgmr.msra.gmra.mrb[0].mxu0 %vm229_vm2, %v196_v10  ;;  %p824_p12 = pnand %p823_p11, %p953_p5  ;;  %p831_p2 = por %p830_p1, %p829_p0 }
  0x1e   : > { %346 = vmatprep.mubr.f32.mxu0 %v886_v1 }
  0x1f   : > { %p825_p13 = pneg %p824_p12 }
  0x21   : > { %725 = vmatmul.mubr.msk.f32.gmra.mrb[2].mxu0 %vm229_vm2, %v197_v11  ;;  %p832_p3 = pnand %p831_p2, %p825_p13 }
  0x22   : > { %352 = vmatprep.mubr.f32.mxu0 %v886_v1 }
  0x25   : > { %726 = vmatmul.mubr.msk.f32.gmra.mrb[4].mxu0 %vm229_vm2, %v198_v12 }
  0x26   : > { %358 = vmatprep.mubr.f32.mxu0 %v886_v1 }
  0x29   : > { %727 = vmatmul.mubr.msk.f32.gmra.mrb[6].mxu0 %vm229_vm2, %v199_v13 }
  0x2a   : > { %364 = vmatprep.mubr.f32.mxu0 %v886_v1 }
  0x2d   : > { %728 = vmatmul.mubr.msk.f32.gmra.mrb[8].mxu0 %vm229_vm2, %v200_v14 }
  0x2e   : > { %370 = vmatprep.mubr.f32.mxu0 %v886_v1 }
  0x31   : > { %729 = vmatmul.mubr.msk.f32.gmra.mrb[10].mxu0 %vm229_vm2, %v201_v15 }
  0x32   : > { %376 = vmatprep.mubr.f32.mxu0 %v886_v1 }
  0x35   : > { %730 = vmatmul.mubr.msk.f32.gmra.mrb[12].mxu0 %vm229_vm2, %v202_v16 }
  0x36   : > { %382 = vmatprep.mubr.f32.mxu0 %v886_v1 }
  0x39   : > { %731 = vmatmul.mubr.msk.f32.gmra.mrb[14].mxu0 %vm229_vm2, %v203_v17 }
  0x3a   : > { %388 = vmatprep.mubr.f32.mxu0 %v886_v1 }
  0x3d   : > { %732 = vmatmul.mubr.msk.f32.gmra.mrb[16].mxu0 %vm229_vm2, %v204_v18 }
  0x3e   : > { %394 = vmatprep.mubr.f32.mxu0 %v886_v1 }
  0x41   : > { %733 = vmatmul.mubr.msk.f32.gmra.mrb[18].mxu0 %vm229_vm2, %v205_v19 }
  0x42   : > { %400 = vmatprep.mubr.f32.mxu0 %v886_v1 }
  0x45   : > { %734 = vmatmul.mubr.msk.f32.gmra.mrb[20].mxu0 %vm229_vm2, %v206_v20 }
  0x46   : > { %406 = vmatprep.mubr.f32.mxu0 %v886_v1 }
  0x49   : > { %735 = vmatmul.mubr.msk.f32.gmra.mrb[22].mxu0 %vm229_vm2, %v207_v21 }
  0x4a   : > { %412 = vmatprep.mubr.f32.mxu0 %v886_v1 }
  0x4d   : > { %736 = vmatmul.mubr.msk.f32.gmra.mrb[24].mxu0 %vm229_vm2, %v208_v22 }
  0xf0   : > { %v342_v23 = vpop.f32.mrb[0].mxu0 }
  0xf1   : > { %v344_v24 = vpop.f32.mrb[1].mxu0  ;;  %v419_v26 = vmax.f32 %v342_v23, 0.0 }
  0xf2   : > { %v420_v29 = vmax.f32 %v344_v24, 0.0 }
  0xf4   : > { %v348_v25 = vpop.f32.mrb[2].mxu0 }
  0xf5   : > { %v421_v27 = vmax.f32 %v348_v25, 0.0  ;;  %v350_v28 = vpop.f32.mrb[3].mxu0 }
  0xf6   : > { %v422_v30 = vmax.f32 %v350_v28, 0.0 }
  0xf7   : > { %v752_v31 = vpack.c.bf16 %v421_v27, %v419_v26  ;;  %v209_v26 = vld [vmem:[%s1101_s2] sm:$0xff]  ;;  %v210_v27 = vld [vmem:[%s1101_s2 + $0x8] sm:$0x7] }
  0xf8   : > { %v354_v32 = vpop.f32.mrb[4].mxu0  ;;  %v750_v33 = vpack.c.bf16 %v422_v30, %v420_v29 }
  0xf9   : > { %v356_v34 = vpop.f32.mrb[5].mxu0  ;;  %v423_v36 = vmax.f32 %v354_v32, 0.0 }
  0xfa   : > { %751 = vmatprep.subr.bf16.mxu1 %v750_v33  ;;  %v424_v39 = vmax.f32 %v356_v34, 0.0 }
  0xfb   : > { %753 = vmatpush1.bf16.msra.mxu1 %v752_v31 }
  0xfc   : > { %v360_v35 = vpop.f32.mrb[6].mxu0 }
  0xfd   : > { %v425_v37 = vmax.f32 %v360_v35, 0.0  ;;  %v362_v38 = vpop.f32.mrb[7].mxu0 }
  0xfe   : > { %v426_v40 = vmax.f32 %v362_v38, 0.0  ;;  %v888_v38 = vmov 1966171168  }
  0xff   : > { %v756_v41 = vpack.c.bf16 %v425_v37, %v423_v36 }
 0x100   : > { %v754_v42 = vpack.c.bf16 %v426_v40, %v424_v39  ;;  %v366_v43 = vpop.f32.mrb[8].mxu0  ;;  %v626_v39 = vunpack.c.l.s4 %v888_v38 }
 0x101   : > { %v368_v44 = vpop.f32.mrb[9].mxu0  ;;  %v427_v46 = vmax.f32 %v366_v43, 0.0 }
 0x102   : > { %755 = vmatprep.subr.bf16.mxu1 %v754_v42  ;;  %v428_v49 = vmax.f32 %v368_v44, 0.0  ;;  %v627_v40 = vunpack.c.0.s8 %v626_v39 }
 0x103   : > { %757 = vmatpush1.bf16.msra.mxu1 %v756_v41 }
 0x104   : > { %v372_v45 = vpop.f32.mrb[10].mxu0  ;;  %v630_v42 = vsub.s32 %v627_v40, %v967_v2 }
 0x105   : > { %v429_v47 = vmax.f32 %v372_v45, 0.0  ;;  %v374_v48 = vpop.f32.mrb[11].mxu0 }
 0x106   : > { %v430_v50 = vmax.f32 %v374_v48, 0.0 }
 0x107   : > { %v760_v51 = vpack.c.bf16 %v429_v47, %v427_v46 }
 0x108   : > { %v758_v52 = vpack.c.bf16 %v430_v50, %v428_v49  ;;  %v378_v53 = vpop.f32.mrb[12].mxu0 }
 0x109   : > { %v380_v54 = vpop.f32.mrb[13].mxu0  ;;  %v431_v56 = vmax.f32 %v378_v53, 0.0 }
 0x10a   : > { %759 = vmatprep.subr.bf16.mxu1 %v758_v52  ;;  %v432_v59 = vmax.f32 %v380_v54, 0.0 }
 0x10b   : > { %761 = vmatpush1.bf16.msra.mxu1 %v760_v51 }
 0x10c   : > { %v384_v55 = vpop.f32.mrb[14].mxu0 }
 0x10d   : > { %v433_v57 = vmax.f32 %v384_v55, 0.0  ;;  %v386_v58 = vpop.f32.mrb[15].mxu0 }
 0x10e   : > { %v434_v60 = vmax.f32 %v386_v58, 0.0 }
 0x10f   : > { %v764_v61 = vpack.c.bf16 %v433_v57, %v431_v56 }
 0x110   : > { %v762_v62 = vpack.c.bf16 %v434_v60, %v432_v59  ;;  %v390_v63 = vpop.f32.mrb[16].mxu0 }
 0x111   : > { %v392_v3 = vpop.f32.mrb[17].mxu0  ;;  %v435_v5 = vmax.f32 %v390_v63, 0.0 }
 0x112   : > { %763 = vmatprep.subr.bf16.mxu1 %v762_v62  ;;  %v436_v8 = vmax.f32 %v392_v3, 0.0 }
 0x113   : > { %765 = vmatpush1.bf16.msra.mxu1 %v764_v61 }
 0x114   : > { %v396_v4 = vpop.f32.mrb[18].mxu0 }
 0x115   : > { %v437_v6 = vmax.f32 %v396_v4, 0.0  ;;  %v398_v7 = vpop.f32.mrb[19].mxu0 }
 0x116   : > { %v438_v9 = vmax.f32 %v398_v7, 0.0 }
 0x117   : > { %v768_v10 = vpack.c.bf16 %v437_v6, %v435_v5 }
 0x118   : > { %v766_v11 = vpack.c.bf16 %v438_v9, %v436_v8  ;;  %v402_v12 = vpop.f32.mrb[20].mxu0 }
 0x119   : > { %v404_v13 = vpop.f32.mrb[21].mxu0  ;;  %v439_v15 = vmax.f32 %v402_v12, 0.0 }
 0x11a   : > { %767 = vmatprep.subr.bf16.mxu1 %v766_v11  ;;  %v440_v18 = vmax.f32 %v404_v13, 0.0 }
 0x11b   : > { %769 = vmatpush1.bf16.msra.mxu1 %v768_v10 }
 0x11c   : > { %v408_v14 = vpop.f32.mrb[22].mxu0 }
 0x11d   : > { %v441_v16 = vmax.f32 %v408_v14, 0.0  ;;  %v410_v17 = vpop.f32.mrb[23].mxu0 }
 0x11e   : > { %v442_v19 = vmax.f32 %v410_v17, 0.0 }
 0x11f   : > { %v772_v20 = vpack.c.bf16 %v441_v16, %v439_v15 }
 0x120   : > { %v770_v21 = vpack.c.bf16 %v442_v19, %v440_v18  ;;  %v414_v22 = vpop.f32.mrb[24].mxu0 }
 0x121   : > { %v416_v23 = vpop.f32.mrb[25].mxu0  ;;  %v443_v25 = vmax.f32 %v414_v22, 0.0 }
 0x122   : > { %v444_v24 = vmax.f32 %v416_v23, 0.0  ;;  %771 = vmatprep.subr.bf16.mxu1 %v770_v21 }
 0x123   : > { %773 = vmatpush1.bf16.msra.mxu1 %v772_v20 }
 0x124   : > { %737 = vmatprep.subr.msk.mxu1 %vm452_vm3, %v444_v24 }
 0x127   : > { %738 = vmatpush1.msk.msra.mxu1 %vm452_vm3, %v443_v25 }
 0x128   : > { %739 = vmatmul.mubr.msk.f32.vlgmr.msra.gmra.mrb[0].mxu1 %vm445_vm4, %v209_v26 }
 0x129   : > { %529 = vmatprep.mubr.f32.mxu1 %v886_v1 }
 0x12c   : > { %740 = vmatmul.mubr.msk.f32.gmra.mrb[2].mxu1 %vm445_vm4, %v210_v27 }
 0x12d   : > { %615 = vmatprep.mubr.f32.mxu1 %v886_v1  ;;  %v211_v1 = vld [vmem:[%s1102_s3] sm:$0x1] }
 0x1fb   : > { %v525_v28 = vpop.f32.mrb[0].mxu1 }
 0x1fc   : > { %v527_v29 = vpop.f32.mrb[1].mxu1  ;;  %v536_v31 = vmax.f32 %v525_v28, 0.0 }
 0x1fd   : > { %v537_v34 = vmax.f32 %v527_v29, 0.0 }
 0x1ff   : > { %v531_v30 = vpop.f32.mrb[2].mxu1 }
 0x200   : > { %v538_v32 = vmax.f32 %v531_v30, 0.0  ;;  %v533_v33 = vpop.f32.mrb[3].mxu1 }
 0x201   : > { %v539_v35 = vmax.f32 %v533_v33, 0.0 }
 0x202   : > { %v777_v36 = vpack.c.bf16 %v538_v32, %v536_v31 }
 0x203   : > { %v774_v37 = vpack.c.bf16 %v539_v35, %v537_v34 }
 0x205   : > { %776 = vmatprep.subr.msk.bf16.mxu1 %vm775_vm7, %v774_v37 }
 0x206   : > { %779 = vmatpush1.bf16.msk.msra.mxu1 %vm775_vm7, %v777_v36 }
 0x209   : > { %743 = vmatmul.mubr.msk.f32.vlgmr.msra.gmra.mrb[4].mxu1 %vm540_vm8, %v211_v1 }
 0x2dc   : > { %v617_v41 = vpop.f32.mrb[4].mxu1 }
 0x2dd   : > { %v619_v43 = vpop.f32.mrb[5].mxu1 }
 0x2de   : > { %v624_v44 = vcombine.low %v617_v41, %v619_v43 }
 0x2e0   : > { %v631_v45 = vrot.slane %v624_v44, %v630_v42 }
 0x2e2   : > { %v638_v46 = vrot.slane %v631_v45, %v630_v42 }
 0x2e4   : > { %644 = vst.msk [vmem:[%s189_s6] sm:$0x3] %vm642_vm9, %v638_v46 }
 0x2e5   : > { %835 = shalt.err (!%p832_p3)
}
 0x2e6   : > { %s836_s20 = scalar_lea.hbm %s1057_s10, 32  ;;  %s840_s27 = scalar_lea.hbm %s1103_s4, 64 }
 0x2e7   : > { %p837_p4 = scmp.ne.s32.totalorder %s1057_s10, %s836_s20  ;;  %p841_p9 = scmp.lt.u32.totalorder %s1057_s10, %s1103_s4 }
 0x2e8   : > { %p842_p10 = scmp.lt.u32.totalorder %s840_s27, %s836_s20  ;;  %p844_p12 = scmp.lt.u32.totalorder %s836_s20, %s1057_s10 }
 0x2e9   : > { %p838_p7 = pnand %p837_p4, %p953_p5 }
 0x2ea   : > { %p843_p11 = por %p842_p10, %p841_p9 }
 0x2eb   : > { %p839_p8 = pneg %p838_p7 }
 0x2ec   : > { %p845_p13 = por %p844_p12, %p843_p11 }
 0x2ee   : > { %p846_p0 = pnand %p845_p13, %p839_p8 }
 0x2f0   : > { %849 = shalt.err (!%p846_p0)
}
 0x2f1   : > { %780 = dma.vmem_to_hbm [thread:$0]  (%p953_p5), %s1059_s7, 32, %s1057_s10, %s646_s11  }
 0x2f2 PF: > { %p786_p1 = scmp.ge.s32.totalorder %s884_s18, 2  ;;  %s672_s30 = sand.u32 1, %s872_s15  }
 0x2f3   : > { %s673_s5 = scalar_lea.sflag [#allocation3], %s672_s30 }
 0x2f4   : > { %p783_p2 = pnand %p786_p1, %p957_p6 }
 0x2f6   : > { %867 = dma.done.wait (!%p783_p2), %s673_s5, 32  }
 0x2f7   : > { %869 = vsyncadd (!%p783_p2), %s673_s5, 4294967264  ;;  %p14_p3 = scmp.ge.s32.totalorder %s940_s21, 4   ;;  %s1106_s15 = smov %s876_s16 }
 0x2f8   : > { %s1107_s16 = smov %s880_s17  ;;  %s1108_s17 = smov %s951_s24 }
 0x2f9   : > { %s1109_s18 = smov %s940_s21  ;;  %16 = sbr.rel (!%p14_p3) target bundleno = 3 (0x3), region = 71 }
 0x300   :  { %678 = vsyncpa [#allocation3], 1 }
 0x301   :  { %680 = vsyncpa [#allocation3 + $0x1], 1 }

</bundles_post_ra>
